<compile_context>
chip_gen: v6e
topology: v6e:2x2x1
jax: 0.10.0
libtpu: 0.0.40
codegen_flags: <defaults>
</compile_context>

<pallas_src>
import functools
import math

import jax
import jax.numpy as jnp
from jax import lax
from jax.experimental import pallas as pl
from jax.experimental.pallas import tpu as pltpu


def _round_up(x, m):
    return ((x + m - 1) // m) * m


def _make_conv_kernel(*, KH, OH_k, Kr, B_blk, M_k, O_pad):
    M_all = B_blk * M_k

    def kernel(x_ref, w_ref, b_ref, o_ref):
        # x_ref : (B_blk, Hp, OW, Kr)   KW-folded, lane-dense activations
        # w_ref : (KH, Kr, O_pad)       weights, kernel-row major
        # b_ref : (1, O_pad)            bias (f32)
        # o_ref : (B_blk, M_k, O_pad)   output rows (oh*OW + ow) per image
        def lhs(i):
            # Slice along H is a major-dim offset (no relayout); the reshape
            # collapses (B, OH_k, OW) into matmul rows and is layout-free when
            # OW is a multiple of the sublane tile (8 f32 / 16 bf16).
            return x_ref[:, i:i + OH_k, :, :].reshape(M_all, Kr)

        # First kernel row initializes the accumulator, with the bias fused in
        # (no zero-init sweep, no separate bias pass).
        acc = jnp.dot(lhs(0), w_ref[0], preferred_element_type=jnp.float32)
        acc = acc + b_ref[...]
        for i in range(1, KH):          # static unroll; KH is tiny (3)
            acc = acc + jnp.dot(lhs(i), w_ref[i],
                                preferred_element_type=jnp.float32)
        o_ref[...] = acc.reshape(B_blk, M_k, O_pad).astype(o_ref.dtype)

    return kernel


def prepare_pruned_conv_weights(weight, bias, compute_dtype=jnp.bfloat16):
    """Pack OIHW weights -> (KH, KW*C, O_pad), bias -> (1, O_pad) f32.

    Static per layer: in a full model, run once and reuse across steps so the
    transpose/pad/cast is not re-executed every call (hoisted layout work).
    """
    O, C, KH, KW = weight.shape
    O_pad = _round_up(O, 128)
    w = jnp.transpose(weight, (2, 3, 1, 0)).reshape(KH, KW * C, O)
    w = jnp.pad(w, ((0, 0), (0, 0), (0, O_pad - O))).astype(compute_dtype)
    b = jnp.pad(bias.astype(jnp.float32), (0, O_pad - O)).reshape(1, O_pad)
    return w, b


@functools.partial(
    jax.jit,
    static_argnames=("stride", "padding", "compute_dtype", "out_dtype",
                     "nchw_output", "nhwc_input"))
def pruned_conv_forward(x, weight, bias, *, stride=1, padding=0,
                        compute_dtype=jnp.bfloat16, out_dtype=None,
                        nchw_output=True, nhwc_input=False):
    """PrunedConv.forward: out = conv2d(x, weight, bias).

    x      : (N, C, H, W) NCHW (PyTorch boundary), or NHWC if nhwc_input=True
    weight : (O, C, KH, KW) OIHW
    bias   : (O,)
    """
    if nhwc_input:
        N, H, W, C = x.shape
        xh = x
    else:
        N, C, H, W = x.shape
        xh = jnp.transpose(x, (0, 2, 3, 1))   # NCHW -> NHWC; keep activations
                                              # NHWC between layers to skip it.
    O, _, KH, KW = weight.shape
    OH = (H + 2 * padding - KH) // stride + 1
    OW = (W + 2 * padding - KW) // stride + 1
    Hp, Wp = H + 2 * padding, W + 2 * padding
    # W-stride is exact (folded into the packing).  For stride > 1 the kernel
    # computes H rows at stride 1 and the wrapper subsamples (CIFAR PrunedConv
    # layers are stride 1, so this path is rarely taken).
    OH_k = OH if stride == 1 else (Hp - KH + 1)
    M_k = OH_k * OW
    Kr = KW * C
    O_pad = _round_up(O, 128)
    out_dtype = x.dtype if out_dtype is None else out_dtype
    cdt = jnp.dtype(compute_dtype)
    odt = jnp.dtype(out_dtype)

    # ---- activation packing: lane-dense K = KW*C, no KH*KW im2col ----------
    xh = xh.astype(compute_dtype)
    xp = jnp.pad(xh, ((0, 0), (padding, padding), (padding, padding), (0, 0)))
    cols = [xp[:, :, j:j + (OW - 1) * stride + 1:stride, :] for j in range(KW)]
    xrow = jnp.concatenate(cols, axis=3)    # (N, Hp, OW, KW*C)
    # xrow[n, h, ow, j*C + c] == xpad[n, h, ow*stride + j, c]

    # ---- weights / bias (static per layer; hoist & cache in a real model) --
    w, b = prepare_pruned_conv_weights(weight, bias, compute_dtype)

    # ---- generation- and layout-aware VMEM budget, batch-block choice ------
    try:
        cap = int(pltpu.get_tpu_info().vmem_capacity_bytes)
    except Exception:
        cap = 64 * 2 ** 20                  # v7x per-TC capacity (safe floor)
    budget = int(0.65 * cap)

    def tile_bytes(shape, dtype):
        # Real VMEM footprint of a block: last dim pads to 128 lanes, second-
        # minor to the dtype's sublane tile (accounts for small C / small K).
        it = jnp.dtype(dtype).itemsize
        sub = max(1, 8 * 4 // it)
        s = (1,) * (2 - len(shape)) + tuple(shape)
        n = 1
        for d in s[:-2]:
            n *= d
        return n * _round_up(s[-2], sub) * _round_up(s[-1], 128) * it

    def est_vmem(bb):
        return (2 * tile_bytes((bb, Hp, OW, Kr), cdt)      # x, double-buffered
                + 2 * tile_bytes((KH, Kr, O_pad), cdt)     # weights (const map,
                                                           #  still 2 buffers)
                + 2 * tile_bytes((1, O_pad), jnp.float32)  # bias
                + 2 * tile_bytes((bb, M_k, O_pad), odt)    # output, double-buf
                + 2 * bb * M_k * O_pad * 4)                # f32 acc temporaries

    best = (False, 1)
    for bb in range(1, min(N, 8) + 1):
        if N % bb:
            continue
        g = N // bb
        if N >= 2 and g < 2:
            continue                        # keep >=2 grid steps for megacore
        if est_vmem(bb) > int(0.75 * budget):
            continue
        cand = ((g % 2) == 0, bb)           # prefer even grids, then bigger bb
        if cand > best:
            best = cand
    B_blk = best[1]
    vmem_limit = int(min(0.85 * cap, max(budget, 1.25 * est_vmem(B_blk))))

    kernel = _make_conv_kernel(KH=KH, OH_k=OH_k, Kr=Kr, B_blk=B_blk,
                               M_k=M_k, O_pad=O_pad)

    out = pl.pallas_call(
        kernel,
        out_shape=jax.ShapeDtypeStruct((N, M_k, O_pad), out_dtype),
        grid_spec=pltpu.PrefetchScalarGridSpec(
            num_scalar_prefetch=0,
            grid=(N // B_blk,),
            in_specs=[
                # B_blk packed images per grid step
                pl.BlockSpec((B_blk, Hp, OW, Kr), lambda n: (n, 0, 0, 0)),
                # Weights: constant index map -> DMA'd once, resident across
                # the grid (double-buffer residency is included in est_vmem;
                # single-buffering via pl.Buffered(1) left out for compile
                # robustness).
                pl.BlockSpec((KH, Kr, O_pad), lambda n: (0, 0, 0)),
                pl.BlockSpec((1, O_pad), lambda n: (0, 0)),
            ],
            out_specs=pl.BlockSpec((B_blk, M_k, O_pad), lambda n: (n, 0, 0)),
        ),
        compiler_params=pltpu.CompilerParams(
            dimension_semantics=("parallel",),   # shard batch steps across TCs
            vmem_limit_bytes=vmem_limit,
        ),
    )(xrow, w, b)

    out = out[:, :, :O].reshape(N, OH_k, OW, O)
    if stride > 1:
        out = out[:, ::stride, :, :][:, :OH]
    if nchw_output:
        out = jnp.transpose(out, (0, 3, 1, 2))   # PyTorch boundary is NCHW
    return out


def init_pruned_conv_params(key, in_channels, out_channels, kernel_size):
    """Mirrors PrunedConv.__init__:
      weight ~ Normal(0, sqrt(2/(n+m))), n = k*k*out, m = k*k*in
      bias   ~ Uniform(-1/sqrt(fan_in), 1/sqrt(fan_in))  (nn.Conv2d default)
    """
    k_w, k_b = jax.random.split(key)
    n = kernel_size * kernel_size * out_channels
    m = kernel_size * kernel_size * in_channels
    std = math.sqrt(2.0 / (n + m))
    weight = std * jax.random.normal(
        k_w, (out_channels, in_channels, kernel_size, kernel_size), jnp.float32)
    fan_in = in_channels * kernel_size * kernel_size
    bound = 1.0 / math.sqrt(fan_in)
    bias = jax.random.uniform(k_b, (out_channels,), jnp.float32, -bound, bound)
    # mask = ones_like(weight): present in the module but unused in forward().
    return weight, bias


if __name__ == "__main__":
    key = jax.random.PRNGKey(0)
    k_x, k_p = jax.random.split(key)

    # Small shapes consistent with a CIFAR-10 conv layer.
    N, C_in, H, W = 2, 4, 16, 16
    C_out, ksize, stride, padding = 8, 3, 1, 1

    x = jax.random.normal(k_x, (N, C_in, H, W), jnp.float32)
    weight, bias = init_pruned_conv_params(k_p, C_in, C_out, ksize)

    # Reference: XLA conv with the same NCHW / OIHW semantics as PyTorch.
    ref = lax.conv_general_dilated(
        x, weight, window_strides=(stride, stride),
        padding=[(padding, padding), (padding, padding)],
        dimension_numbers=("NCHW", "OIHW", "NCHW"),
    ) + bias.reshape(1, C_out, 1, 1)

    # Default (bf16 operands, f32 accumulation) path.
    out = pruned_conv_forward(x, weight, bias, stride=stride, padding=padding)
    out = jax.block_until_ready(out)
    assert out.shape == (N, C_out, H, W)
    assert jnp.allclose(out, ref, atol=5e-2, rtol=5e-2)

    # f32-operand path for a tight numerical check of the kernel logic.
    out_f32 = pruned_conv_forward(x, weight, bias, stride=stride,
                                  padding=padding,
                                  compute_dtype=jnp.float32)
    out_f32 = jax.block_until_ready(out_f32)
    assert jnp.allclose(out_f32, ref, atol=1e-4, rtol=1e-4)

    print("KERNEL_OK")
</pallas_src>

<mosaic_0001>
module attributes {stable_mosaic.version = 11 : i64} {
  func.func @kernel(%arg0: i32, %arg1: memref<1x18x16x12xbf16, #tpu.memory_space<vmem>>, %arg2: memref<3x12x128xbf16, #tpu.memory_space<vmem>>, %arg3: memref<1x128xf32, #tpu.memory_space<vmem>>, %arg4: memref<1x256x128xf32, #tpu.memory_space<vmem>>) attributes {dimension_semantics = [#tpu.dimension_semantics<parallel>], iteration_bounds = array<i64: 2>, scalar_prefetch = 0 : i64, scratch_operands = 0 : i64, tpu.core_type = #tpu.core_type<tc>, window_params = [{transform_indices = @transform_0, window_bounds = array<i64: 1, 18, 16, 12>}, {pipeline_mode = #tpu.pipeline_mode<synchronous>, transform_indices = @transform_1, window_bounds = array<i64: 3, 12, 128>}, {pipeline_mode = #tpu.pipeline_mode<synchronous>, transform_indices = @transform_2, window_bounds = array<i64: 1, 128>}, {transform_indices = @transform_3, window_bounds = array<i64: 1, 256, 128>}]} {
    %c0 = arith.constant 0 : index
    %c0_0 = arith.constant 0 : index
    %c0_1 = arith.constant 0 : index
    %c0_2 = arith.constant 0 : index
    %0 = vector.load %arg1[%c0, %c0_0, %c0_1, %c0_2] : memref<1x18x16x12xbf16, #tpu.memory_space<vmem>>, vector<1x16x16x12xbf16>
    %1 = vector.shape_cast %0 : vector<1x16x16x12xbf16> to vector<256x12xbf16>
    %c0_3 = arith.constant 0 : index
    %c0_4 = arith.constant 0 : index
    %c0_5 = arith.constant 0 : index
    %2 = vector.load %arg2[%c0_3, %c0_4, %c0_5] : memref<3x12x128xbf16, #tpu.memory_space<vmem>>, vector<1x12x128xbf16>
    %3 = vector.shape_cast %2 : vector<1x12x128xbf16> to vector<12x128xbf16>
    %cst = arith.constant dense<0.000000e+00> : vector<256x128xf32>
    %4 = tpu.matmul %1, %3, %cst {dimension_numbers = #tpu.dot_dimension_numbers<[1], [0], [0], [1], [0, 0, 1, 1], [], []>} : vector<256x12xbf16>, vector<12x128xbf16>, vector<256x128xf32> -> vector<256x128xf32>
    %c0_6 = arith.constant 0 : index
    %c0_7 = arith.constant 0 : index
    %5 = vector.load %arg3[%c0_6, %c0_7] : memref<1x128xf32, #tpu.memory_space<vmem>>, vector<1x128xf32>
    %6 = vector.broadcast %5 : vector<1x128xf32> to vector<256x128xf32>
    %7 = arith.addf %4, %6 : vector<256x128xf32>
    %c0_8 = arith.constant 0 : index
    %c1 = arith.constant 1 : index
    %c0_9 = arith.constant 0 : index
    %c0_10 = arith.constant 0 : index
    %8 = vector.load %arg1[%c0_8, %c1, %c0_9, %c0_10] : memref<1x18x16x12xbf16, #tpu.memory_space<vmem>>, vector<1x16x16x12xbf16>
    %9 = vector.shape_cast %8 : vector<1x16x16x12xbf16> to vector<256x12xbf16>
    %c1_11 = arith.constant 1 : index
    %c0_12 = arith.constant 0 : index
    %c0_13 = arith.constant 0 : index
    %10 = vector.load %arg2[%c1_11, %c0_12, %c0_13] : memref<3x12x128xbf16, #tpu.memory_space<vmem>>, vector<1x12x128xbf16>
    %11 = vector.shape_cast %10 : vector<1x12x128xbf16> to vector<12x128xbf16>
    %cst_14 = arith.constant dense<0.000000e+00> : vector<256x128xf32>
    %12 = tpu.matmul %9, %11, %cst_14 {dimension_numbers = #tpu.dot_dimension_numbers<[1], [0], [0], [1], [0, 0, 1, 1], [], []>} : vector<256x12xbf16>, vector<12x128xbf16>, vector<256x128xf32> -> vector<256x128xf32>
    %13 = arith.addf %7, %12 : vector<256x128xf32>
    %c0_15 = arith.constant 0 : index
    %c2 = arith.constant 2 : index
    %c0_16 = arith.constant 0 : index
    %c0_17 = arith.constant 0 : index
    %14 = vector.load %arg1[%c0_15, %c2, %c0_16, %c0_17] : memref<1x18x16x12xbf16, #tpu.memory_space<vmem>>, vector<1x16x16x12xbf16>
    %15 = vector.shape_cast %14 : vector<1x16x16x12xbf16> to vector<256x12xbf16>
    %c2_18 = arith.constant 2 : index
    %c0_19 = arith.constant 0 : index
    %c0_20 = arith.constant 0 : index
    %16 = vector.load %arg2[%c2_18, %c0_19, %c0_20] : memref<3x12x128xbf16, #tpu.memory_space<vmem>>, vector<1x12x128xbf16>
    %17 = vector.shape_cast %16 : vector<1x12x128xbf16> to vector<12x128xbf16>
    %cst_21 = arith.constant dense<0.000000e+00> : vector<256x128xf32>
    %18 = tpu.matmul %15, %17, %cst_21 {dimension_numbers = #tpu.dot_dimension_numbers<[1], [0], [0], [1], [0, 0, 1, 1], [], []>} : vector<256x12xbf16>, vector<12x128xbf16>, vector<256x128xf32> -> vector<256x128xf32>
    %19 = arith.addf %13, %18 : vector<256x128xf32>
    %20 = vector.shape_cast %19 : vector<256x128xf32> to vector<1x256x128xf32>
    %c0_22 = arith.constant 0 : index
    %c0_23 = arith.constant 0 : index
    %c0_24 = arith.constant 0 : index
    %21 = vector.load %arg4[%c0_22, %c0_23, %c0_24] : memref<1x256x128xf32, #tpu.memory_space<vmem>>, vector<1x256x128xf32>
    tpu.vector_store %arg4[%c0_22, %c0_23, %c0_24], %20 {strides = array<i32>} : memref<1x256x128xf32, #tpu.memory_space<vmem>>, vector<1x256x128xf32>,
    return
  }
  func.func @transform_0(%arg0: i32) -> (i32, i32, i32, i32) {
    %c0_i32 = arith.constant 0 : i32
    %c0_i32_0 = arith.constant 0 : i32
    %c0_i32_1 = arith.constant 0 : i32
    %c0_i32_2 = arith.constant 0 : i32
    return %arg0, %c0_i32, %c0_i32_0, %c0_i32_1 : i32, i32, i32, i32
  }
  func.func @transform_1(%arg0: i32) -> (i32, i32, i32) {
    %c0_i32 = arith.constant 0 : i32
    %c0_i32_0 = arith.constant 0 : i32
    %c0_i32_1 = arith.constant 0 : i32
    %c0_i32_2 = arith.constant 0 : i32
    return %c0_i32, %c0_i32_0, %c0_i32_1 : i32, i32, i32
  }
  func.func @transform_2(%arg0: i32) -> (i32, i32) {
    %c0_i32 = arith.constant 0 : i32
    %c0_i32_0 = arith.constant 0 : i32
    %c0_i32_1 = arith.constant 0 : i32
    return %c0_i32, %c0_i32_0 : i32, i32
  }
  func.func @transform_3(%arg0: i32) -> (i32, i32, i32) {
    %c0_i32 = arith.constant 0 : i32
    %c0_i32_0 = arith.constant 0 : i32
    %c0_i32_1 = arith.constant 0 : i32
    return %arg0, %c0_i32, %c0_i32_0 : i32, i32, i32
  }
}

</mosaic_0001>

<bundles_post_ra>
// kernel: pruned_conv_forward.1
= control target key start
LH: loop header
LB: loop body
LE: loop exit
PB: predicated region body
PF: predicated region fallthrough
CT: control target
= control target key end

     0   :  { %s1755_s12 = smov 0   ;;  %s2030_s0 = inlined_call_operand.vmem [shape: bf16[2,18,16,12], index: 0, kind: input, shape index: {}]   ;;  %s2031_s1 = inlined_call_operand.vmem [shape: bf16[3,12,128], index: 1, kind: input, shape index: {}]   ;;  %s2032_s2 = inlined_call_operand.vmem [shape: f32[1,128], index: 2, kind: input, shape index: {}]   ;;  %s2033_s3 = inlined_call_operand.vmem [shape: f32[2,256,128], index: 3, kind: output, shape index: {}]  }
   0x1 LB: > { %s1329_s13 = sadd.s32 4294967295, %s1733_s12   ;;  %p1333_p0 = scmp.ge.s32.totalorder %s1733_s12, 1  ;;  %s1733_s12 = sphi %s1755_s12, %s13_s12  }
   0x2   : > { %p137_p1 = scmp.lt.s32.totalorder %s1733_s12, 3 }
   0x4   : > { %p138_p2 = pnand %p1333_p0, %p137_p1 }
   0x5   : > { %p161_p3 = scmp.lt.s32.totalorder (!%p138_p2), %s1329_s13, 1 }
   0x6   : > { %141 = sbr.rel (%p138_p2) target bundleno = 310 (0x136), region = 32 }
   0xb   : > { %v1676_v0 = vld [vmem:[%s2031_s1] sm:$0x3f]   ;;  %vm347_vm0 = vcmask 1045504   ;;  %v1679_v2 = vld [vmem:[%s2031_s1 + $0x8] sm:$0x3f]   ;;  %s2035_s13 = smov (!%p161_p3, %s1329_s13), 1 }
   0xc   : > { %1664 = vmatprep.subr.msk.bf16.mxu1 %vm347_vm0, %v1676_v0  ;;  %1663 = vmatprep.subr.msk.bf16.mxu0 %vm347_vm0, %v1676_v0  ;;  %v349_v1 = vsel %vm347_vm0, %v1676_v0, 0  ;;  %v1682_v3 = vld [vmem:[%s2031_s1 + $0x10] sm:$0x3f]   ;;  %s1667_s20 = smul.u32 144, %s2035_s13  ;;  %vm298_vm1 = vcmask 97280   ;;  %v682_v9 = vsel %vm347_vm0, %v1679_v2, 0 }
   0xd   : > { %1662 = vmatpush3.bf16.msra.mxu1 %v349_v1  ;;  %1560 = vmatpush3.bf16.msra.mxu0 %v349_v1  ;;  %v1047_v7 = vsel %vm347_vm0, %v1682_v3, 0  ;;  %s1507_s26 = sshll.u32 %s2035_s13, 8 }
   0xe   : > { %1665 = vmatprep.subr.msk.bf16.mxu1 %vm347_vm0, %v1679_v2  ;;  %1666 = vmatprep.subr.msk.bf16.mxu0 %vm347_vm0, %v1682_v3  ;;  %s1783_s23 = scalar_lea.vmem %s2030_s0, %s1667_s20  ;;  %s1940_s29 = scalar_lea.vmem %s2033_s3, %s1507_s26 }
   0xf   : > { %v1677_v4 = vld [vmem:[%s1783_s23] sm:$0xff]   ;;  %v1680_v6 = vld [vmem:[%s1783_s23 + $0x8] sm:$0xff]   ;;  %v1683_v10 = vld [vmem:[%s1783_s23 + $0x10] sm:$0xff]  }
  0x10   : > { %v1678_v5 = vld [vmem:[%s1783_s23 + $0x40] sm:$0xff]   ;;  %1561 = vmatprep.mubr.msk.bf16.mxu0 %vm298_vm1, %v1677_v4  ;;  %v1681_v8 = vld [vmem:[%s1783_s23 + $0x48] sm:$0xff]   ;;  %v1684_v11 = vld [vmem:[%s1783_s23 + $0x50] sm:$0xff]  }
  0x11   : > { %1577 = vmatprep.mubr.msk.bf16.mxu1 %vm298_vm1, %v1678_v5  ;;  %1562 = vmatmul.mubr.msk.bf16.vlgmr.msra.gmra.mxu0 %vm298_vm1, %v1680_v6  ;;  %v1685_v12 = vld [vmem:[%s1783_s23 + $0x18] sm:$0xff]   ;;  %v1687_v14 = vld [vmem:[%s1783_s23 + $0x20] sm:$0xff]   ;;  %v1689_v16 = vld [vmem:[%s1783_s23 + $0x28] sm:$0xff]  }
  0x12   : > { %1578 = vmatmul.mubr.msk.bf16.vlgmr.msra.gmra.mxu1 %vm298_vm1, %v1681_v8  ;;  %1628 = vmatpush3.bf16.msra.mxu0 %v1047_v7  ;;  %v1686_v13 = vld [vmem:[%s1783_s23 + $0x58] sm:$0xff]   ;;  %v1688_v15 = vld [vmem:[%s1783_s23 + $0x60] sm:$0xff]   ;;  %v1690_v17 = vld [vmem:[%s1783_s23 + $0x68] sm:$0xff]  }
  0x13   : > { %1594 = vmatpush3.bf16.msra.mxu1 %v682_v9  ;;  %1565 = vmatprep.mubr.msk.bf16.mxu0 %vm298_vm1, %v1683_v10  ;;  %v1691_v18 = vld [vmem:[%s1783_s23 + $0x30] sm:$0xff]   ;;  %v1693_v20 = vld [vmem:[%s1783_s23 + $0x38] sm:$0xff]   ;;  %v1695_v23 = vld [vmem:[%s1783_s23 + $0x8] sm:$0xff]  }
  0x14   : > { %1581 = vmatprep.mubr.msk.bf16.mxu1 %vm298_vm1, %v1684_v11  ;;  %v1692_v19 = vld [vmem:[%s1783_s23 + $0x70] sm:$0xff]   ;;  %v1694_v21 = vld [vmem:[%s1783_s23 + $0x78] sm:$0xff]   ;;  %v1700_v26 = vld [vmem:[%s1783_s23 + $0x20] sm:$0xff]  }
  0x15   : > { %v1696_v22 = vld [vmem:[%s1783_s23 + $0x10] sm:$0xff]   ;;  %v1698_v25 = vld [vmem:[%s1783_s23 + $0x18] sm:$0xff]   ;;  %v1701_v28 = vld [vmem:[%s1783_s23 + $0x20] sm:$0xff]  }
  0x16   : > { %v1697_v24 = vld [vmem:[%s1783_s23 + $0x10] sm:$0xff]   ;;  %v1699_v27 = vld [vmem:[%s1783_s23 + $0x18] sm:$0xff]   ;;  %v1702_v29 = vld [vmem:[%s1783_s23 + $0x28] sm:$0xff]  }
  0x17   : > { %v1704_v30 = vld [vmem:[%s1783_s23 + $0x30] sm:$0xff]   ;;  %v1703_v31 = vld [vmem:[%s1783_s23 + $0x28] sm:$0xff]   ;;  %v1706_v32 = vld [vmem:[%s1783_s23 + $0x38] sm:$0xff]  }
  0x18   : > { %v1705_v33 = vld [vmem:[%s1783_s23 + $0x30] sm:$0xff]   ;;  %v1708_v34 = vld [vmem:[%s1783_s23 + $0x40] sm:$0xff]   ;;  %v1707_v35 = vld [vmem:[%s1783_s23 + $0x38] sm:$0xff]  }
  0x19   : > { %1566 = vmatmul.mubr.msk.bf16.gmra.mxu0 %vm298_vm1, %v1685_v12  ;;  %v1710_v36 = vld [vmem:[%s1783_s23 + $0x48] sm:$0xff]   ;;  %v1709_v37 = vld [vmem:[%s1783_s23 + $0x40] sm:$0xff]   ;;  %v1712_v38 = vld [vmem:[%s1783_s23 + $0x50] sm:$0xff]  }
  0x1a   : > { %1582 = vmatmul.mubr.msk.bf16.gmra.mxu1 %vm298_vm1, %v1686_v13  ;;  %1569 = vmatprep.mubr.msk.bf16.mxu0 %vm298_vm1, %v1687_v14  ;;  %v1711_v39 = vld [vmem:[%s1783_s23 + $0x48] sm:$0xff]   ;;  %v1714_v40 = vld [vmem:[%s1783_s23 + $0x58] sm:$0xff]   ;;  %v1713_v41 = vld [vmem:[%s1783_s23 + $0x50] sm:$0xff]  }
  0x1b   : > { %1585 = vmatprep.mubr.msk.bf16.mxu1 %vm298_vm1, %v1688_v15  ;;  %v1716_v42 = vld [vmem:[%s1783_s23 + $0x60] sm:$0xff]   ;;  %v1715_v43 = vld [vmem:[%s1783_s23 + $0x58] sm:$0xff]   ;;  %v1718_v44 = vld [vmem:[%s1783_s23 + $0x68] sm:$0xff]  }
  0x1c   : > { %v1717_v45 = vld [vmem:[%s1783_s23 + $0x60] sm:$0xff]   ;;  %v1720_v46 = vld [vmem:[%s1783_s23 + $0x70] sm:$0xff]   ;;  %v1719_v47 = vld [vmem:[%s1783_s23 + $0x68] sm:$0xff]  }
  0x1d   : > { %v1722_v48 = vld [vmem:[%s1783_s23 + $0x78] sm:$0xff]   ;;  %v1721_v49 = vld [vmem:[%s1783_s23 + $0x70] sm:$0xff]   ;;  %v1724_v50 = vld [vmem:[%s1783_s23 + $0x80] sm:$0xff]  }
  0x1e   : > { %v1723_v51 = vld [vmem:[%s1783_s23 + $0x78] sm:$0xff]   ;;  %v1726_v52 = vld [vmem:[%s1783_s23 + $0x88] sm:$0xff]   ;;  %v1725_v53 = vld [vmem:[%s1783_s23 + $0x80] sm:$0xff]  }
  0x21   : > { %1570 = vmatmul.mubr.msk.bf16.gmra.mxu0 %vm298_vm1, %v1689_v16 }
  0x22   : > { %1586 = vmatmul.mubr.msk.bf16.gmra.mxu1 %vm298_vm1, %v1690_v17  ;;  %1573 = vmatprep.mubr.msk.bf16.mxu0 %vm298_vm1, %v1691_v18 }
  0x23   : > { %1589 = vmatprep.mubr.msk.bf16.mxu1 %vm298_vm1, %v1692_v19 }
  0x29   : > { %1574 = vmatmul.mubr.msk.bf16.gmra.mxu0 %vm298_vm1, %v1693_v20 }
  0x2a   : > { %1590 = vmatmul.mubr.msk.bf16.gmra.mxu1 %vm298_vm1, %v1694_v21  ;;  %1629 = vmatprep.mubr.msk.bf16.mxu0 %vm298_vm1, %v1696_v22  ;;  %v1930_v21 = vld [vmem:[%s2032_s2] ss:$0 sm:$0xff] }
  0x2b   : > { %1595 = vmatprep.mubr.msk.bf16.mxu1 %vm298_vm1, %v1695_v23 }
  0x31   : > { %1630 = vmatmul.mubr.msk.bf16.vlgmr.msra.gmra.mxu0 %vm298_vm1, %v1698_v25 }
  0x32   : > { %1596 = vmatmul.mubr.msk.bf16.vlgmr.msra.gmra.mxu1 %vm298_vm1, %v1697_v24  ;;  %1633 = vmatprep.mubr.msk.bf16.mxu0 %vm298_vm1, %v1700_v26 }
  0x33   : > { %1599 = vmatprep.mubr.msk.bf16.mxu1 %vm298_vm1, %v1699_v27 }
  0x39   : > { %1634 = vmatmul.mubr.msk.bf16.gmra.mxu0 %vm298_vm1, %v1702_v29 }
  0x3a   : > { %1600 = vmatmul.mubr.msk.bf16.gmra.mxu1 %vm298_vm1, %v1701_v28  ;;  %1637 = vmatprep.mubr.msk.bf16.mxu0 %vm298_vm1, %v1704_v30 }
  0x3b   : > { %1603 = vmatprep.mubr.msk.bf16.mxu1 %vm298_vm1, %v1703_v31 }
  0x41   : > { %1638 = vmatmul.mubr.msk.bf16.gmra.mxu0 %vm298_vm1, %v1706_v32 }
  0x42   : > { %1604 = vmatmul.mubr.msk.bf16.gmra.mxu1 %vm298_vm1, %v1705_v33  ;;  %1641 = vmatprep.mubr.msk.bf16.mxu0 %vm298_vm1, %v1708_v34 }
  0x43   : > { %1607 = vmatprep.mubr.msk.bf16.mxu1 %vm298_vm1, %v1707_v35 }
  0x49   : > { %1642 = vmatmul.mubr.msk.bf16.gmra.mxu0 %vm298_vm1, %v1710_v36 }
  0x4a   : > { %1608 = vmatmul.mubr.msk.bf16.gmra.mxu1 %vm298_vm1, %v1709_v37  ;;  %1645 = vmatprep.mubr.msk.bf16.mxu0 %vm298_vm1, %v1712_v38 }
  0x4b   : > { %1611 = vmatprep.mubr.msk.bf16.mxu1 %vm298_vm1, %v1711_v39 }
  0x51   : > { %1646 = vmatmul.mubr.msk.bf16.gmra.mxu0 %vm298_vm1, %v1714_v40 }
  0x52   : > { %1612 = vmatmul.mubr.msk.bf16.gmra.mxu1 %vm298_vm1, %v1713_v41  ;;  %1649 = vmatprep.mubr.msk.bf16.mxu0 %vm298_vm1, %v1716_v42 }
  0x53   : > { %1615 = vmatprep.mubr.msk.bf16.mxu1 %vm298_vm1, %v1715_v43 }
  0x59   : > { %1650 = vmatmul.mubr.msk.bf16.gmra.mxu0 %vm298_vm1, %v1718_v44 }
  0x5a   : > { %1616 = vmatmul.mubr.msk.bf16.gmra.mxu1 %vm298_vm1, %v1717_v45  ;;  %1653 = vmatprep.mubr.msk.bf16.mxu0 %vm298_vm1, %v1720_v46 }
  0x5b   : > { %1619 = vmatprep.mubr.msk.bf16.mxu1 %vm298_vm1, %v1719_v47 }
  0x61   : > { %1654 = vmatmul.mubr.msk.bf16.gmra.mxu0 %vm298_vm1, %v1722_v48 }
  0x62   : > { %1620 = vmatmul.mubr.msk.bf16.gmra.mxu1 %vm298_vm1, %v1721_v49  ;;  %1657 = vmatprep.mubr.msk.bf16.mxu0 %vm298_vm1, %v1724_v50 }
  0x63   : > { %1623 = vmatprep.mubr.msk.bf16.mxu1 %vm298_vm1, %v1723_v51 }
  0x69   : > { %1658 = vmatmul.mubr.msk.bf16.gmra.mxu0 %vm298_vm1, %v1726_v52 }
  0x6a   : > { %1624 = vmatmul.mubr.msk.bf16.gmra.mxu1 %vm298_vm1, %v1725_v53 }
  0xd1   : > { %v1563_v54 = vpop.f32.mrf.mxu0 }
  0xd2   : > { %v1883_v55 = vpop.f32.mrf.mxu1  ;;  %v394_v23 = vadd.f32 %v1563_v54, %v1930_v21 }
  0xd3   : > { %v385_v56 = vpop.f32.mrf.mxu0 }
  0xd4   : > { %v1885_v57 = vpop.f32.mrf.mxu1  ;;  %v386_v26 = vadd.f32 %v1930_v21, %v385_v56 }
  0xd5   : > { %v1564_v58 = vpop.f32.mrf.mxu0 }
  0xd6   : > { %v1887_v59 = vpop.f32.mrf.mxu1  ;;  %v397_v30 = vadd.f32 %v1564_v58, %v1930_v21 }
  0xd7   : > { %v388_v60 = vpop.f32.mrf.mxu0 }
  0xd8   : > { %v1889_v61 = vpop.f32.mrf.mxu1  ;;  %v389_v35 = vadd.f32 %v1930_v21, %v388_v60 }
  0xd9   : > { %v1567_v62 = vpop.f32.mrf.mxu0 }
  0xda   : > { %v1891_v63 = vpop.f32.mrf.mxu1  ;;  %v410_v40 = vadd.f32 %v1567_v62, %v1930_v21 }
  0xdb   : > { %v401_v0 = vpop.f32.mrf.mxu0 }
  0xdc   : > { %v1893_v1 = vpop.f32.mrf.mxu1  ;;  %v402_v45 = vadd.f32 %v1930_v21, %v401_v0 }
  0xdd   : > { %v1568_v2 = vpop.f32.mrf.mxu0 }
  0xde   : > { %v1895_v3 = vpop.f32.mrf.mxu1  ;;  %v413_v50 = vadd.f32 %v1568_v2, %v1930_v21 }
  0xdf   : > { %v404_v4 = vpop.f32.mrf.mxu0 }
  0xe0   : > { %v1897_v5 = vpop.f32.mrf.mxu1  ;;  %v405_v56 = vadd.f32 %v1930_v21, %v404_v4 }
  0xe1   : > { %v1571_v6 = vpop.f32.mrf.mxu0 }
  0xe2   : > { %v1899_v7 = vpop.f32.mrf.mxu1 }
  0xe3   : > { %v1901_v8 = vpop.f32.mrf.mxu0 }
  0xe4   : > { %v1903_v9 = vpop.f32.mrf.mxu1 }
  0xe5   : > { %v1905_v10 = vpop.f32.mrf.mxu0 }
  0xe6   : > { %v1907_v11 = vpop.f32.mrf.mxu1 }
  0xe7   : > { %v1909_v12 = vpop.f32.mrf.mxu0 }
  0xe8   : > { %v1911_v13 = vpop.f32.mrf.mxu1 }
  0xe9   : > { %v1913_v14 = vpop.f32.mrf.mxu0 }
  0xea   : > { %v1915_v15 = vpop.f32.mrf.mxu1 }
  0xeb   : > { %v1917_v16 = vpop.f32.mrf.mxu0 }
  0xec   : > { %v1919_v17 = vpop.f32.mrf.mxu1 }
  0xed   : > { %v1921_v18 = vpop.f32.mrf.mxu0 }
  0xee   : > { %v1923_v19 = vpop.f32.mrf.mxu1 }
  0xef   : > { %v1925_v20 = vpop.f32.mrf.mxu0 }
  0xf0   : > { %v1932_v22 = vpop.f32.mrf.mxu1 }
  0xf1   : > { %v1631_v24 = vpop.f32.mrf.mxu0 }
  0xf2   : > { %v1597_v25 = vpop.f32.mrf.mxu1 }
  0xf3   : > { %v847_v27 = vadd.f32 %v1597_v25, %v394_v23  ;;  %v1083_v28 = vpop.f32.mrf.mxu0  ;;  %v426_v23 = vadd.f32 %v1571_v6, %v1930_v21 }
  0xf4   : > { %v718_v29 = vpop.f32.mrf.mxu1 }
  0xf5   : > { %v1212_v31 = vadd.f32 %v1631_v24, %v847_v27  ;;  %v845_v32 = vadd.f32 %v718_v29, %v386_v26  ;;  %v1632_v33 = vpop.f32.mrf.mxu0  ;;  %v418_v27 = vadd.f32 %v1930_v21, %v1901_v8 }
  0xf6   : > { %v1598_v34 = vpop.f32.mrf.mxu1 }
  0xf7   : > { %1244 = vst [vmem:[%s1940_s29 + $0x10] sm:$0xff] %v1212_v31  ;;  %v1210_v36 = vadd.f32 %v1083_v28, %v845_v32  ;;  %v848_v37 = vadd.f32 %v1598_v34, %v397_v30  ;;  %v1086_v38 = vpop.f32.mrf.mxu0  ;;  %v429_v31 = vadd.f32 %v1905_v10, %v1930_v21 }
  0xf8   : > { %v721_v39 = vpop.f32.mrf.mxu1 }
  0xf9   : > { %1242 = vst [vmem:[%s1940_s29] sm:$0xff] %v1210_v36  ;;  %v1213_v41 = vadd.f32 %v1632_v33, %v848_v37  ;;  %v846_v42 = vadd.f32 %v721_v39, %v389_v35  ;;  %v1635_v43 = vpop.f32.mrf.mxu0  ;;  %v421_v35 = vadd.f32 %v1930_v21, %v1909_v12  ;;  %v442_v39 = vadd.f32 %v1913_v14, %v1930_v21 }
  0xfa   : > { %v1601_v44 = vpop.f32.mrf.mxu1 }
  0xfb   : > { %1245 = vst [vmem:[%s1940_s29 + $0x18] sm:$0xff] %v1213_v41  ;;  %v1211_v46 = vadd.f32 %v1086_v38, %v846_v42  ;;  %v851_v47 = vadd.f32 %v1601_v44, %v410_v40  ;;  %v1099_v48 = vpop.f32.mrf.mxu0 }
  0xfc   : > { %v734_v49 = vpop.f32.mrf.mxu1 }
  0xfd   : > { %1243 = vst [vmem:[%s1940_s29 + $0x8] sm:$0xff] %v1211_v46  ;;  %v1216_v51 = vadd.f32 %v1635_v43, %v851_v47  ;;  %v849_v52 = vadd.f32 %v734_v49, %v402_v45  ;;  %v1636_v53 = vpop.f32.mrf.mxu0  ;;  %v434_v43 = vadd.f32 %v1930_v21, %v1917_v16  ;;  %v445_v47 = vadd.f32 %v1921_v18, %v1930_v21 }
  0xfe   : > { %v1602_v54 = vpop.f32.mrf.mxu1 }
  0xff   : > { %1248 = vst [vmem:[%s1940_s29 + $0x30] sm:$0xff] %v1216_v51  ;;  %v1214_v58 = vadd.f32 %v1099_v48, %v849_v52  ;;  %v852_v60 = vadd.f32 %v1602_v54, %v413_v50  ;;  %v1102_v62 = vpop.f32.mrf.mxu0  ;;  %v437_v51 = vadd.f32 %v1930_v21, %v1925_v20 }
 0x100   : > { %v737_v0 = vpop.f32.mrf.mxu1 }
 0x101   : > { %1246 = vst [vmem:[%s1940_s29 + $0x20] sm:$0xff] %v1214_v58  ;;  %v1217_v24 = vadd.f32 %v1636_v53, %v852_v60  ;;  %v850_v25 = vadd.f32 %v737_v0, %v405_v56  ;;  %v1639_v2 = vpop.f32.mrf.mxu0  ;;  %v458_v56 = vadd.f32 %v1883_v55, %v1930_v21  ;;  %v450_v0 = vadd.f32 %v1930_v21, %v1885_v57 }
 0x102   : > { %v1605_v26 = vpop.f32.mrf.mxu1 }
 0x103   : > { %1249 = vst [vmem:[%s1940_s29 + $0x38] sm:$0xff] %v1217_v24  ;;  %v1215_v28 = vadd.f32 %v1102_v62, %v850_v25  ;;  %v855_v4 = vadd.f32 %v1605_v26, %v426_v23  ;;  %v1115_v29 = vpop.f32.mrf.mxu0 }
 0x104   : > { %v750_v30 = vpop.f32.mrf.mxu1 }
 0x105   : > { %1247 = vst [vmem:[%s1940_s29 + $0x28] sm:$0xff] %v1215_v28  ;;  %v1220_v6 = vadd.f32 %v1639_v2, %v855_v4  ;;  %v853_v32 = vadd.f32 %v750_v30, %v418_v27  ;;  %v1640_v33 = vpop.f32.mrf.mxu0  ;;  %v461_v2 = vadd.f32 %v1887_v59, %v1930_v21  ;;  %v453_v4 = vadd.f32 %v1930_v21, %v1889_v61 }
 0x106   : > { %v1606_v34 = vpop.f32.mrf.mxu1 }
 0x107   : > { %1252 = vst [vmem:[%s1940_s29 + $0x50] sm:$0xff] %v1220_v6  ;;  %v1218_v8 = vadd.f32 %v1115_v29, %v853_v32  ;;  %v856_v36 = vadd.f32 %v1606_v34, %v429_v31  ;;  %v1118_v37 = vpop.f32.mrf.mxu0  ;;  %v474_v6 = vadd.f32 %v1891_v63, %v1930_v21 }
 0x108   : > { %v753_v38 = vpop.f32.mrf.mxu1 }
 0x109   : > { %1250 = vst [vmem:[%s1940_s29 + $0x40] sm:$0xff] %v1218_v8  ;;  %v1221_v10 = vadd.f32 %v1640_v33, %v856_v36  ;;  %v854_v40 = vadd.f32 %v753_v38, %v421_v35  ;;  %v1643_v41 = vpop.f32.mrf.mxu0  ;;  %v466_v35 = vadd.f32 %v1930_v21, %v1893_v1  ;;  %v477_v38 = vadd.f32 %v1895_v3, %v1930_v21 }
 0x10a   : > { %v1609_v42 = vpop.f32.mrf.mxu1 }
 0x10b   : > { %1253 = vst [vmem:[%s1940_s29 + $0x58] sm:$0xff] %v1221_v10  ;;  %v1219_v12 = vadd.f32 %v1118_v37, %v854_v40  ;;  %v859_v44 = vadd.f32 %v1609_v42, %v442_v39  ;;  %v1131_v45 = vpop.f32.mrf.mxu0 }
 0x10c   : > { %v766_v46 = vpop.f32.mrf.mxu1 }
 0x10d   : > { %1251 = vst [vmem:[%s1940_s29 + $0x48] sm:$0xff] %v1219_v12  ;;  %v1224_v14 = vadd.f32 %v1643_v41, %v859_v44  ;;  %v857_v48 = vadd.f32 %v766_v46, %v434_v43  ;;  %v1644_v49 = vpop.f32.mrf.mxu0  ;;  %v469_v41 = vadd.f32 %v1930_v21, %v1897_v5  ;;  %v490_v44 = vadd.f32 %v1899_v7, %v1930_v21 }
 0x10e   : > { %v1610_v50 = vpop.f32.mrf.mxu1 }
 0x10f   : > { %1256 = vst [vmem:[%s1940_s29 + $0x70] sm:$0xff] %v1224_v14  ;;  %v1222_v16 = vadd.f32 %v1131_v45, %v857_v48  ;;  %v860_v52 = vadd.f32 %v1610_v50, %v445_v47  ;;  %v1134_v53 = vpop.f32.mrf.mxu0  ;;  %v482_v14 = vadd.f32 %v1930_v21, %v1903_v9 }
 0x110   : > { %v769_v54 = vpop.f32.mrf.mxu1 }
 0x111   : > { %1254 = vst [vmem:[%s1940_s29 + $0x60] sm:$0xff] %v1222_v16  ;;  %v1225_v18 = vadd.f32 %v1644_v49, %v860_v52  ;;  %v858_v58 = vadd.f32 %v769_v54, %v437_v51  ;;  %v1647_v60 = vpop.f32.mrf.mxu0  ;;  %v493_v51 = vadd.f32 %v1907_v11, %v1930_v21  ;;  %v485_v54 = vadd.f32 %v1930_v21, %v1911_v13 }
 0x112   : > { %v1613_v62 = vpop.f32.mrf.mxu1 }
 0x113   : > { %1257 = vst [vmem:[%s1940_s29 + $0x78] sm:$0xff] %v1225_v18  ;;  %v1223_v20 = vadd.f32 %v1134_v53, %v858_v58  ;;  %v863_v23 = vadd.f32 %v1613_v62, %v458_v56  ;;  %v1147_v24 = vpop.f32.mrf.mxu0 }
 0x114   : > { %v782_v25 = vpop.f32.mrf.mxu1 }
 0x115   : > { %1255 = vst [vmem:[%s1940_s29 + $0x68] sm:$0xff] %v1223_v20  ;;  %v1228_v55 = vadd.f32 %v1647_v60, %v863_v23  ;;  %v861_v26 = vadd.f32 %v782_v25, %v450_v0  ;;  %v1648_v27 = vpop.f32.mrf.mxu0  ;;  %v506_v60 = vadd.f32 %v1915_v15, %v1930_v21  ;;  %v498_v23 = vadd.f32 %v1930_v21, %v1919_v17 }
 0x116   : > { %v1614_v28 = vpop.f32.mrf.mxu1 }
 0x117   : > { %1260 = vst [vmem:[%s1940_s29 + $0x90] sm:$0xff] %v1228_v55  ;;  %v1226_v57 = vadd.f32 %v1147_v24, %v861_v26  ;;  %v864_v29 = vadd.f32 %v1614_v28, %v461_v2  ;;  %v1150_v30 = vpop.f32.mrf.mxu0  ;;  %v509_v55 = vadd.f32 %v1923_v19, %v1930_v21 }
 0x118   : > { %v785_v31 = vpop.f32.mrf.mxu1 }
 0x119   : > { %1258 = vst [vmem:[%s1940_s29 + $0x80] sm:$0xff] %v1226_v57  ;;  %v1229_v59 = vadd.f32 %v1648_v27, %v864_v29  ;;  %v862_v32 = vadd.f32 %v785_v31, %v453_v4  ;;  %v1651_v33 = vpop.f32.mrf.mxu0  ;;  %v501_v4 = vadd.f32 %v1930_v21, %v1932_v22 }
 0x11a   : > { %v1617_v34 = vpop.f32.mrf.mxu1 }
 0x11b   : > { %1261 = vst [vmem:[%s1940_s29 + $0x98] sm:$0xff] %v1229_v59  ;;  %v1227_v61 = vadd.f32 %v1150_v30, %v862_v32  ;;  %v867_v8 = vadd.f32 %v1617_v34, %v474_v6  ;;  %v1163_v36 = vpop.f32.mrf.mxu0 }
 0x11c   : > { %v798_v37 = vpop.f32.mrf.mxu1 }
 0x11d   : > { %1259 = vst [vmem:[%s1940_s29 + $0x88] sm:$0xff] %v1227_v61  ;;  %v1232_v63 = vadd.f32 %v1651_v33, %v867_v8  ;;  %v865_v39 = vadd.f32 %v798_v37, %v466_v35  ;;  %v1652_v10 = vpop.f32.mrf.mxu0 }
 0x11e   : > { %v1618_v40 = vpop.f32.mrf.mxu1 }
 0x11f   : > { %1264 = vst [vmem:[%s1940_s29 + $0xb0] sm:$0xff] %v1232_v63  ;;  %v1230_v1 = vadd.f32 %v1163_v36, %v865_v39  ;;  %v868_v42 = vadd.f32 %v1618_v40, %v477_v38  ;;  %v1166_v43 = vpop.f32.mrf.mxu0 }
 0x120   : > { %v801_v12 = vpop.f32.mrf.mxu1 }
 0x121   : > { %1262 = vst [vmem:[%s1940_s29 + $0xa0] sm:$0xff] %v1230_v1  ;;  %v1233_v3 = vadd.f32 %v1652_v10, %v868_v42  ;;  %v866_v45 = vadd.f32 %v801_v12, %v469_v41  ;;  %v1655_v46 = vpop.f32.mrf.mxu0 }
 0x122   : > { %v1621_v47 = vpop.f32.mrf.mxu1 }
 0x123   : > { %1265 = vst [vmem:[%s1940_s29 + $0xb8] sm:$0xff] %v1233_v3  ;;  %v1231_v5 = vadd.f32 %v1166_v43, %v866_v45  ;;  %v871_v48 = vadd.f32 %v1621_v47, %v490_v44  ;;  %v1179_v49 = vpop.f32.mrf.mxu0 }
 0x124   : > { %v814_v50 = vpop.f32.mrf.mxu1 }
 0x125   : > { %1263 = vst [vmem:[%s1940_s29 + $0xa8] sm:$0xff] %v1231_v5  ;;  %v1236_v7 = vadd.f32 %v1655_v46, %v871_v48  ;;  %v869_v16 = vadd.f32 %v814_v50, %v482_v14  ;;  %v1656_v52 = vpop.f32.mrf.mxu0 }
 0x126   : > { %v1622_v53 = vpop.f32.mrf.mxu1 }
 0x127   : > { %1268 = vst [vmem:[%s1940_s29 + $0xd0] sm:$0xff] %v1236_v7  ;;  %v1234_v9 = vadd.f32 %v1179_v49, %v869_v16  ;;  %v872_v56 = vadd.f32 %v1622_v53, %v493_v51  ;;  %v1182_v18 = vpop.f32.mrf.mxu0 }
 0x128   : > { %v817_v58 = vpop.f32.mrf.mxu1 }
 0x129   : > { %1266 = vst [vmem:[%s1940_s29 + $0xc0] sm:$0xff] %v1234_v9  ;;  %v1237_v11 = vadd.f32 %v1656_v52, %v872_v56  ;;  %v870_v62 = vadd.f32 %v817_v58, %v485_v54  ;;  %v1659_v0 = vpop.f32.mrf.mxu0 }
 0x12a   : > { %v1625_v20 = vpop.f32.mrf.mxu1 }
 0x12b   : > { %1269 = vst [vmem:[%s1940_s29 + $0xd8] sm:$0xff] %v1237_v11  ;;  %v1235_v13 = vadd.f32 %v1182_v18, %v870_v62  ;;  %v875_v24 = vadd.f32 %v1625_v20, %v506_v60  ;;  %v1195_v25 = vpop.f32.mrf.mxu0 }
 0x12c   : > { %v830_v2 = vpop.f32.mrf.mxu1 }
 0x12d   : > { %1267 = vst [vmem:[%s1940_s29 + $0xc8] sm:$0xff] %v1235_v13  ;;  %v1240_v15 = vadd.f32 %v1659_v0, %v875_v24  ;;  %v873_v26 = vadd.f32 %v830_v2, %v498_v23  ;;  %v1660_v28 = vpop.f32.mrf.mxu0 }
 0x12e   : > { %v1626_v27 = vpop.f32.mrf.mxu1 }
 0x12f   : > { %1272 = vst [vmem:[%s1940_s29 + $0xf0] sm:$0xff] %v1240_v15  ;;  %v1238_v17 = vadd.f32 %v1195_v25, %v873_v26  ;;  %v876_v57 = vadd.f32 %v1626_v27, %v509_v55  ;;  %v1198_v6 = vpop.f32.mrf.mxu0 }
 0x130   : > { %v833_v29 = vpop.f32.mrf.mxu1 }
 0x131   : > { %1270 = vst [vmem:[%s1940_s29 + $0xe0] sm:$0xff] %v1238_v17  ;;  %v1241_v30 = vadd.f32 %v1660_v28, %v876_v57  ;;  %v874_v31 = vadd.f32 %v833_v29, %v501_v4 }
 0x133   : > { %1273 = vst [vmem:[%s1940_s29 + $0xf8] sm:$0xff] %v1241_v30  ;;  %v1239_v59 = vadd.f32 %v1198_v6, %v874_v31 }
 0x135   : > { %1271 = vst [vmem:[%s1940_s29 + $0xe8] sm:$0xff] %v1239_v59 }
 0x136 PF: > { %s13_s12 = sadd.s32 1, %s1733_s12  }
 0x137   : > { %p10_p4 = scmp.ge.s32.totalorder %s13_s12, 4  }
 0x139   :  { %12 = sbr.rel (!%p10_p4) target bundleno = 1 (0x1), region = 66 }

</bundles_post_ra>
